<compile_context>
chip_gen: v7x
topology: tpu7x:2x2x1
jax: 0.10.0
libtpu: 0.0.40
codegen_flags: <defaults>
</compile_context>

<pallas_src>
import math

import numpy as np
import jax
import jax.numpy as jnp
from jax import lax
from jax.experimental import pallas as pl
from jax.experimental.pallas import tpu as pltpu


# ----------------------------- Pallas kernel ------------------------------


def _make_mhsa_kernel(*, g, dk, use_roll, compute_dtype, acc_in_out):
    """Builds the per-(batch, head-group) kernel body."""
    half = dk // 2
    gdk = g * dk

    def kernel(x_ref, wqkv_ref, wo_ref, cos_ref, sin_ref, bias_ref, o_ref,
               *scratch):
        hg = pl.program_id(1)
        acc_ref = o_ref if acc_in_out else scratch[0]

        @pl.when(hg == 0)
        def _init():
            acc_ref[...] = jnp.zeros_like(acc_ref)

        x = x_ref[...]                     # (S, D)  compute_dtype
        cos = cos_ref[...]                 # (S, dk) f32
        sin = sin_ref[...]                 # (S, dk) f32 (sign pre-folded on roll path)
        bias = bias_ref[...]               # (S, S)  f32 additive causal mask

        # One fused, lane-dense projection for this head group's Q/K/V
        # (plus QR/KR columns on the small-dk fallback path).
        qkv = jnp.dot(x, wqkv_ref[...], preferred_element_type=jnp.float32)

        ctx_parts = []
        for i in range(g):                 # static unroll over heads in the group
            lo, hi = i * dk, (i + 1) * dk
            if use_roll:
                q = qkv[:, 0 * gdk + lo:0 * gdk + hi]
                k = qkv[:, 1 * gdk + lo:1 * gdk + hi]
                v = qkv[:, 2 * gdk + lo:2 * gdk + hi]
                # Rotate-half RoPE (weights column-permuted on the host);
                # pltpu.roll uses the XLU slot -> free alongside MXU/VPU.
                q = q * cos + pltpu.roll(q, shift=half, axis=1) * sin
                k = k * cos + pltpu.roll(k, shift=half, axis=1) * sin
            else:
                q = qkv[:, 0 * gdk + lo:0 * gdk + hi]
                qr = qkv[:, 1 * gdk + lo:1 * gdk + hi]
                k = qkv[:, 2 * gdk + lo:2 * gdk + hi]
                kr = qkv[:, 3 * gdk + lo:3 * gdk + hi]
                v = qkv[:, 4 * gdk + lo:4 * gdk + hi]
                q = q * cos + qr * sin     # RoPE with host-folded rotation R
                k = k * cos + kr * sin

            # scores = q @ k.T (contract on dk).  MXU inputs in compute_dtype,
            # f32 accumulation; softmax math stays in f32.
            s = lax.dot_general(q.astype(compute_dtype), k.astype(compute_dtype),
                                (((1,), (1,)), ((), ())),
                                preferred_element_type=jnp.float32)    # (S, S)
            s = s + bias
            s = s - jnp.max(s, axis=-1, keepdims=True)
            p = jnp.exp(s)
            p = p * pl.reciprocal(jnp.sum(p, axis=-1, keepdims=True), approx=True)

            ctx_parts.append(
                jnp.dot(p.astype(compute_dtype), v.astype(compute_dtype),
                        preferred_element_type=jnp.float32))           # (S, dk)

        # Output projection for this head group, accumulated across groups
        # directly in the VMEM-resident output (or scratch) block.
        if g == 1 or dk % 128 == 0:
            ctx = ctx_parts[0] if g == 1 else jnp.concatenate(ctx_parts, axis=-1)
            acc_ref[...] += jnp.dot(ctx.astype(compute_dtype), wo_ref[...],
                                    preferred_element_type=jnp.float32)
        else:
            # Small-dk fallback: avoid sub-128 lane concatenation; per-head
            # output projections via sublane-aligned static slices of Wo.
            proj = jnp.dot(ctx_parts[0].astype(compute_dtype), wo_ref[0:dk, :],
                           preferred_element_type=jnp.float32)
            for i in range(1, g):
                proj = proj + jnp.dot(ctx_parts[i].astype(compute_dtype),
                                      wo_ref[i * dk:(i + 1) * dk, :],
                                      preferred_element_type=jnp.float32)
            acc_ref[...] += proj

        if not acc_in_out:
            @pl.when(hg == pl.num_programs(1) - 1)
            def _finalize():
                o_ref[...] = acc_ref[...].astype(o_ref.dtype)

    return kernel


# ------------------------------- wrapper -----------------------------------


def causal_mhsa_pallas(x, wq, wk, wv, wo, *, n_heads, rope_theta=10000.0,
                       token_positions=None, heads_per_block=None,
                       compute_dtype=jnp.bfloat16):
    """Pallas-backed CausalMHSA forward.

    x: (B, S, D); weights are PyTorch nn.Linear style (out, in), y = x @ W.T.
    """
    out_dtype = x.dtype
    B, S, D = x.shape
    assert D % n_heads == 0, "d_model must be divisible by n_heads"
    dk = D // n_heads
    half = dk // 2
    scale = 1.0 / math.sqrt(dk)

    # Head-group (MXU-fill) blocking: g=2 pairs heads so projection matmuls are
    # 2*dk wide (256 at dk=128 -> fills v6e/v7x MXU) and halves acc RMW passes.
    if heads_per_block is None:
        heads_per_block = 2 if n_heads % 2 == 0 else 1
    g = heads_per_block
    assert n_heads % g == 0, "heads_per_block must divide n_heads"
    n_groups = n_heads // g
    gdk = g * dk

    # Rotate-half-via-roll RoPE only when the roll is lane-aligned.
    use_roll = (dk % 128 == 0)

    # ---------------- host-side tables ----------------
    if token_positions is None:
        pos = jnp.arange(S, dtype=jnp.float32)
    else:
        pos = token_positions.astype(jnp.float32)   # TODO(synk): untested path
    inv_freq = rope_theta ** (-(jnp.arange(half, dtype=jnp.float32) * 2.0) / dk)
    ang = pos[:, None] * inv_freq[None, :]          # (S, dk/2)
    if use_roll:
        cos_tab = jnp.concatenate([jnp.cos(ang), jnp.cos(ang)], axis=-1)   # (S, dk)
        sin_tab = jnp.concatenate([-jnp.sin(ang), jnp.sin(ang)], axis=-1)  # sign folded
    else:
        cos_tab = jnp.repeat(jnp.cos(ang), 2, axis=-1)                     # (S, dk)
        sin_tab = jnp.repeat(jnp.sin(ang), 2, axis=-1)

    # Precomputed additive causal mask (single VPU add per step in-kernel).
    causal = jnp.tril(jnp.ones((S, S), bool))
    mask_bias = jnp.where(causal, 0.0, -1e30).astype(jnp.float32)

    # ---------------- host-side weight prep ----------------
    def per_head(w, s=1.0):
        # PyTorch (out, in) -> (in, out) -> per-head (H, D, dk).
        return (w.T.astype(jnp.float32) * s).reshape(D, n_heads, dk).transpose(1, 0, 2)

    wq_h = per_head(wq, scale)          # 1/sqrt(dk) folded into Q weights
    wk_h = per_head(wk)
    wv_h = per_head(wv)

    if use_roll:
        # Permute each head's Q/K columns into rotate-half (evens | odds) layout.
        perm = jnp.concatenate([jnp.arange(0, dk, 2), jnp.arange(1, dk, 2)])
        parts = [wq_h[:, :, perm], wk_h[:, :, perm], wv_h]          # Q, K, V
    else:
        # Fold interleaved pair-rotation R into extra Q/K columns (VPU-only RoPE).
        idx = jnp.arange(half)
        R = jnp.zeros((dk, dk), jnp.float32)
        R = R.at[2 * idx + 1, 2 * idx].set(-1.0)
        R = R.at[2 * idx, 2 * idx + 1].set(1.0)
        parts = [wq_h, wq_h @ R, wk_h, wk_h @ R, wv_h]              # Q, QR, K, KR, V

    def group_cols(w_h):
        # (H, D, dk) -> (n_groups, D, g*dk); heads-major inside the group.
        return w_h.reshape(n_groups, g, D, dk).transpose(0, 2, 1, 3).reshape(
            n_groups, D, gdk)

    wqkv = jnp.concatenate([group_cols(p) for p in parts],
                           axis=-1).astype(compute_dtype)
    n_cols = wqkv.shape[-1]                                         # n_types * g * dk

    # Output projection: (out, in=H*dk) -> (H, dk, D) -> (n_groups, g*dk, D).
    wo_g = wo.T.astype(jnp.float32).reshape(n_heads, dk, D)
    wo_g = wo_g.reshape(n_groups, gdk, D).astype(compute_dtype)

    x_c = x.astype(compute_dtype)

    # Accumulate straight into the VMEM-resident output block when it is f32.
    acc_in_out = (out_dtype == jnp.float32)
    scratch_shapes = [] if acc_in_out else [pltpu.VMEM((S, D), jnp.float32)]

    # ---------------- explicit VMEM budget ----------------
    cbytes = np.dtype(compute_dtype).itemsize
    per_step = (
        2 * S * D * cbytes            # x block (double-buffered)
        + 2 * D * n_cols * cbytes     # fused QKV(+rot) weights
        + 2 * gdk * D * cbytes        # Wo
        + 2 * 2 * S * dk * 4          # cos / sin tables
        + 2 * S * S * 4               # additive causal mask
        + 2 * S * D * 4               # output block (f32)
        + (0 if acc_in_out else S * D * 4)
        + 6 * S * S * 4               # score / softmax temporaries (headroom)
        + 2 * S * n_cols * 4          # projected activations
    )
    # Floor at the 32 MiB default scoped limit; cap at v7x's 64 MiB physical VMEM.
    vmem_limit = int(min(max(per_step * 3 // 2, 32 * 1024 * 1024),
                         64 * 1024 * 1024))

    kernel = _make_mhsa_kernel(g=g, dk=dk, use_roll=use_roll,
                               compute_dtype=compute_dtype, acc_in_out=acc_in_out)

    grid_spec = pltpu.PrefetchScalarGridSpec(
        num_scalar_prefetch=0,
        grid=(B, n_groups),
        in_specs=[
            pl.BlockSpec((pl.Squeezed(), S, D), lambda b, h: (b, 0, 0)),       # x
            pl.BlockSpec((pl.Squeezed(), D, n_cols), lambda b, h: (h, 0, 0)),  # fused W
            pl.BlockSpec((pl.Squeezed(), gdk, D), lambda b, h: (h, 0, 0)),     # Wo
            pl.BlockSpec((S, dk), lambda b, h: (0, 0)),                        # cos
            pl.BlockSpec((S, dk), lambda b, h: (0, 0)),                        # sin
            pl.BlockSpec((S, S), lambda b, h: (0, 0)),                         # causal bias
        ],
        out_specs=pl.BlockSpec((pl.Squeezed(), S, D), lambda b, h: (b, 0, 0)),
        scratch_shapes=scratch_shapes,
    )

    return pl.pallas_call(
        kernel,
        out_shape=jax.ShapeDtypeStruct((B, S, D), out_dtype),
        grid_spec=grid_spec,
        compiler_params=pltpu.CompilerParams(
            dimension_semantics=("parallel", "arbitrary"),
            vmem_limit_bytes=vmem_limit),
    )(x_c, wqkv, wo_g, cos_tab, sin_tab, mask_bias)


# --------------------------- pure-JAX reference ----------------------------


def causal_mhsa_ref(x, wq, wk, wv, wo, *, n_heads, rope_theta=10000.0):
    B, S, D = x.shape
    dk = D // n_heads
    q = x @ wq.T
    k = x @ wk.T
    v = x @ wv.T
    q = q.reshape(B, S, n_heads, dk).transpose(0, 2, 1, 3)
    k = k.reshape(B, S, n_heads, dk).transpose(0, 2, 1, 3)
    v = v.reshape(B, S, n_heads, dk).transpose(0, 2, 1, 3)

    pos = jnp.arange(S, dtype=jnp.float32)
    half = dk // 2
    inv_freq = rope_theta ** (-(jnp.arange(half, dtype=jnp.float32) * 2.0) / dk)
    ang = pos[:, None] * inv_freq[None, :]
    cosv, sinv = jnp.cos(ang), jnp.sin(ang)

    def rope(t):  # t: (B, H, S, dk), interleaved pairs
        t2 = t.reshape(B, n_heads, S, half, 2)
        te, to = t2[..., 0], t2[..., 1]
        re = te * cosv - to * sinv
        ro = to * cosv + te * sinv
        return jnp.stack([re, ro], axis=-1).reshape(B, n_heads, S, dk)

    q, k = rope(q), rope(k)
    scores = jnp.einsum("bhqd,bhkd->bhqk", q, k) / math.sqrt(dk)
    mask = jnp.tril(jnp.ones((S, S), bool))
    scores = jnp.where(mask, scores, -1e30)
    probs = jax.nn.softmax(scores, axis=-1)
    ctx = jnp.einsum("bhqk,bhkd->bhqd", probs, v)
    ctx = ctx.transpose(0, 2, 1, 3).reshape(B, S, D)
    return ctx @ wo.T


# --------------------------------- main ------------------------------------


if __name__ == "__main__":
    # ---- small config (d_model=32, 4 heads, head_dim=8): folded-R RoPE path ----
    B, S, D, H = 2, 8, 32, 4
    key = jax.random.PRNGKey(0)
    kx, kq, kk, kv, ko = jax.random.split(key, 5)
    x = jax.random.normal(kx, (B, S, D), jnp.float32)
    wq = jax.random.normal(kq, (D, D), jnp.float32) * 0.05
    wk = jax.random.normal(kk, (D, D), jnp.float32) * 0.05
    wv = jax.random.normal(kv, (D, D), jnp.float32) * 0.05
    wo = jax.random.normal(ko, (D, D), jnp.float32) * 0.05

    ref = causal_mhsa_ref(x, wq, wk, wv, wo, n_heads=H)

    out_f32 = jax.block_until_ready(
        causal_mhsa_pallas(x, wq, wk, wv, wo, n_heads=H,
                           compute_dtype=jnp.float32))
    assert out_f32.shape == (B, S, D)
    assert jnp.allclose(out_f32, ref, atol=2e-3, rtol=2e-3), "f32 path mismatch"

    out_bf16 = jax.block_until_ready(
        causal_mhsa_pallas(x, wq, wk, wv, wo, n_heads=H,
                           compute_dtype=jnp.bfloat16))
    assert out_bf16.shape == (B, S, D)
    assert jnp.allclose(out_bf16, ref, atol=3e-2, rtol=3e-2), "bf16 path mismatch"

    # ---- small config with head_dim=128: rotate-half + pltpu.roll RoPE path ----
    B2, S2, H2 = 2, 8, 2
    D2 = H2 * 128
    kx2, kq2, kk2, kv2, ko2 = jax.random.split(jax.random.PRNGKey(1), 5)
    x2 = jax.random.normal(kx2, (B2, S2, D2), jnp.float32)
    wq2 = jax.random.normal(kq2, (D2, D2), jnp.float32) * 0.02
    wk2 = jax.random.normal(kk2, (D2, D2), jnp.float32) * 0.02
    wv2 = jax.random.normal(kv2, (D2, D2), jnp.float32) * 0.02
    wo2 = jax.random.normal(ko2, (D2, D2), jnp.float32) * 0.02

    ref2 = causal_mhsa_ref(x2, wq2, wk2, wv2, wo2, n_heads=H2)
    out2 = jax.block_until_ready(
        causal_mhsa_pallas(x2, wq2, wk2, wv2, wo2, n_heads=H2,
                           compute_dtype=jnp.bfloat16))
    assert out2.shape == (B2, S2, D2)
    assert jnp.allclose(out2, ref2, atol=3e-2, rtol=3e-2), "roll-path mismatch"

    print("KERNEL_OK")
</pallas_src>

<mosaic_0001>
module attributes {stable_mosaic.version = 11 : i64} {
  func.func @kernel(%arg0: i32, %arg1: i32, %arg2: memref<1x8x32xf32, #tpu.memory_space<vmem>>, %arg3: memref<1x32x80xf32, #tpu.memory_space<vmem>>, %arg4: memref<1x16x32xf32, #tpu.memory_space<vmem>>, %arg5: memref<8x8xf32, #tpu.memory_space<vmem>>, %arg6: memref<8x8xf32, #tpu.memory_space<vmem>>, %arg7: memref<8x8xf32, #tpu.memory_space<vmem>>, %arg8: memref<1x8x32xf32, #tpu.memory_space<vmem>>) attributes {dimension_semantics = [#tpu.dimension_semantics<parallel>, #tpu.dimension_semantics<arbitrary>], iteration_bounds = array<i64: 2, 2>, scalar_prefetch = 0 : i64, scratch_operands = 0 : i64, tpu.core_type = #tpu.core_type<tc>, window_params = [{transform_indices = @transform_0, window_bounds = array<i64: 1, 8, 32>}, {transform_indices = @transform_1, window_bounds = array<i64: 1, 32, 80>}, {transform_indices = @transform_2, window_bounds = array<i64: 1, 16, 32>}, {pipeline_mode = #tpu.pipeline_mode<synchronous>, transform_indices = @transform_3, window_bounds = array<i64: 8, 8>}, {pipeline_mode = #tpu.pipeline_mode<synchronous>, transform_indices = @transform_4, window_bounds = array<i64: 8, 8>}, {pipeline_mode = #tpu.pipeline_mode<synchronous>, transform_indices = @transform_5, window_bounds = array<i64: 8, 8>}, {transform_indices = @transform_6, window_bounds = array<i64: 1, 8, 32>}]} {
    %c0_i32 = arith.constant 0 : i32
    %0 = arith.cmpi eq, %arg1, %c0_i32 : i32
    %1 = arith.extui %0 : i1 to i32
    %c0_i32_0 = arith.constant 0 : i32
    %2 = arith.cmpi ne, %1, %c0_i32_0 : i32
    scf.if %2 {
      %cst_33 = arith.constant 0.000000e+00 : f32
      %72 = vector.broadcast %cst_33 : f32 to vector<8x32xf32>
      %c0_34 = arith.constant 0 : index
      %c0_35 = arith.constant 0 : index
      %c0_36 = arith.constant 0 : index
      %73 = vector.load %arg8[%c0_34, %c0_35, %c0_36] : memref<1x8x32xf32, #tpu.memory_space<vmem>>, vector<1x8x32xf32>
      %74 = vector.shape_cast %73 : vector<1x8x32xf32> to vector<8x32xf32>
      %75 = vector.shape_cast %72 : vector<8x32xf32> to vector<1x8x32xf32>
      tpu.vector_store %arg8[%c0_34, %c0_35, %c0_36], %75 {strides = array<i32>} : memref<1x8x32xf32, #tpu.memory_space<vmem>>, vector<1x8x32xf32>,
    } else {
    }
    %c0 = arith.constant 0 : index
    %c0_1 = arith.constant 0 : index
    %c0_2 = arith.constant 0 : index
    %3 = vector.load %arg2[%c0, %c0_1, %c0_2] : memref<1x8x32xf32, #tpu.memory_space<vmem>>, vector<1x8x32xf32>
    %4 = vector.shape_cast %3 : vector<1x8x32xf32> to vector<8x32xf32>
    %c0_3 = arith.constant 0 : index
    %c0_4 = arith.constant 0 : index
    %5 = vector.load %arg5[%c0_3, %c0_4] : memref<8x8xf32, #tpu.memory_space<vmem>>, vector<8x8xf32>
    %c0_5 = arith.constant 0 : index
    %c0_6 = arith.constant 0 : index
    %6 = vector.load %arg6[%c0_5, %c0_6] : memref<8x8xf32, #tpu.memory_space<vmem>>, vector<8x8xf32>
    %c0_7 = arith.constant 0 : index
    %c0_8 = arith.constant 0 : index
    %7 = vector.load %arg7[%c0_7, %c0_8] : memref<8x8xf32, #tpu.memory_space<vmem>>, vector<8x8xf32>
    %c0_9 = arith.constant 0 : index
    %c0_10 = arith.constant 0 : index
    %c0_11 = arith.constant 0 : index
    %8 = vector.load %arg3[%c0_9, %c0_10, %c0_11] : memref<1x32x80xf32, #tpu.memory_space<vmem>>, vector<1x32x80xf32>
    %9 = vector.shape_cast %8 : vector<1x32x80xf32> to vector<32x80xf32>
    %cst = arith.constant dense<0.000000e+00> : vector<8x80xf32>
    %10 = tpu.matmul %4, %9, %cst {dimension_numbers = #tpu.dot_dimension_numbers<[1], [0], [0], [1], [0, 0, 1, 1], [], []>} : vector<8x32xf32>, vector<32x80xf32>, vector<8x80xf32> -> vector<8x80xf32>
    %11 = vector.extract_strided_slice %10 {offsets = [0, 0], sizes = [8, 8], strides = [1, 1]} : vector<8x80xf32> to vector<8x8xf32>
    %12 = vector.extract_strided_slice %10 {offsets = [0, 16], sizes = [8, 8], strides = [1, 1]} : vector<8x80xf32> to vector<8x8xf32>
    %13 = vector.extract_strided_slice %10 {offsets = [0, 32], sizes = [8, 8], strides = [1, 1]} : vector<8x80xf32> to vector<8x8xf32>
    %14 = vector.extract_strided_slice %10 {offsets = [0, 48], sizes = [8, 8], strides = [1, 1]} : vector<8x80xf32> to vector<8x8xf32>
    %15 = vector.extract_strided_slice %10 {offsets = [0, 64], sizes = [8, 8], strides = [1, 1]} : vector<8x80xf32> to vector<8x8xf32>
    %16 = arith.mulf %11, %5 : vector<8x8xf32>
    %17 = arith.mulf %12, %6 : vector<8x8xf32>
    %18 = arith.addf %16, %17 : vector<8x8xf32>
    %19 = arith.mulf %13, %5 : vector<8x8xf32>
    %20 = arith.mulf %14, %6 : vector<8x8xf32>
    %21 = arith.addf %19, %20 : vector<8x8xf32>
    %cst_12 = arith.constant dense<0.000000e+00> : vector<8x8xf32>
    %22 = tpu.matmul %18, %21, %cst_12 {dimension_numbers = #tpu.dot_dimension_numbers<[1], [1], [0], [0], [0, 0, 1, 0], [], []>} : vector<8x8xf32>, vector<8x8xf32>, vector<8x8xf32> -> vector<8x8xf32>
    %23 = arith.addf %22, %7 : vector<8x8xf32>
    %cst_13 = arith.constant dense<0xFF800000> : vector<8xf32>
    %24 = vector.multi_reduction <maximumf>, %23, %cst_13 [1] : vector<8x8xf32> to vector<8xf32>
    %25 = vector.shape_cast %24 : vector<8xf32> to vector<8x1xf32>
    %26 = vector.broadcast %25 : vector<8x1xf32> to vector<8x8xf32>
    %27 = arith.subf %23, %26 : vector<8x8xf32>
    %28 = math.exp %27 : vector<8x8xf32>
    %cst_14 = arith.constant dense<0.000000e+00> : vector<8xf32>
    %29 = vector.multi_reduction <add>, %28, %cst_14 [1] : vector<8x8xf32> to vector<8xf32>
    %30 = vector.shape_cast %29 : vector<8xf32> to vector<8x1xf32>
    %31 = tpu.reciprocal %30 {approx = true} : vector<8x1xf32> -> vector<8x1xf32>
    %32 = vector.broadcast %31 : vector<8x1xf32> to vector<8x8xf32>
    %33 = arith.mulf %28, %32 : vector<8x8xf32>
    %cst_15 = arith.constant dense<0.000000e+00> : vector<8x8xf32>
    %34 = tpu.matmul %33, %15, %cst_15 {dimension_numbers = #tpu.dot_dimension_numbers<[1], [0], [0], [1], [0, 0, 1, 1], [], []>} : vector<8x8xf32>, vector<8x8xf32>, vector<8x8xf32> -> vector<8x8xf32>
    %35 = vector.extract_strided_slice %10 {offsets = [0, 8], sizes = [8, 8], strides = [1, 1]} : vector<8x80xf32> to vector<8x8xf32>
    %36 = vector.extract_strided_slice %10 {offsets = [0, 24], sizes = [8, 8], strides = [1, 1]} : vector<8x80xf32> to vector<8x8xf32>
    %37 = vector.extract_strided_slice %10 {offsets = [0, 40], sizes = [8, 8], strides = [1, 1]} : vector<8x80xf32> to vector<8x8xf32>
    %38 = vector.extract_strided_slice %10 {offsets = [0, 56], sizes = [8, 8], strides = [1, 1]} : vector<8x80xf32> to vector<8x8xf32>
    %39 = vector.extract_strided_slice %10 {offsets = [0, 72], sizes = [8, 8], strides = [1, 1]} : vector<8x80xf32> to vector<8x8xf32>
    %40 = arith.mulf %35, %5 : vector<8x8xf32>
    %41 = arith.mulf %36, %6 : vector<8x8xf32>
    %42 = arith.addf %40, %41 : vector<8x8xf32>
    %43 = arith.mulf %37, %5 : vector<8x8xf32>
    %44 = arith.mulf %38, %6 : vector<8x8xf32>
    %45 = arith.addf %43, %44 : vector<8x8xf32>
    %cst_16 = arith.constant dense<0.000000e+00> : vector<8x8xf32>
    %46 = tpu.matmul %42, %45, %cst_16 {dimension_numbers = #tpu.dot_dimension_numbers<[1], [1], [0], [0], [0, 0, 1, 0], [], []>} : vector<8x8xf32>, vector<8x8xf32>, vector<8x8xf32> -> vector<8x8xf32>
    %47 = arith.addf %46, %7 : vector<8x8xf32>
    %cst_17 = arith.constant dense<0xFF800000> : vector<8xf32>
    %48 = vector.multi_reduction <maximumf>, %47, %cst_17 [1] : vector<8x8xf32> to vector<8xf32>
    %49 = vector.shape_cast %48 : vector<8xf32> to vector<8x1xf32>
    %50 = vector.broadcast %49 : vector<8x1xf32> to vector<8x8xf32>
    %51 = arith.subf %47, %50 : vector<8x8xf32>
    %52 = math.exp %51 : vector<8x8xf32>
    %cst_18 = arith.constant dense<0.000000e+00> : vector<8xf32>
    %53 = vector.multi_reduction <add>, %52, %cst_18 [1] : vector<8x8xf32> to vector<8xf32>
    %54 = vector.shape_cast %53 : vector<8xf32> to vector<8x1xf32>
    %55 = tpu.reciprocal %54 {approx = true} : vector<8x1xf32> -> vector<8x1xf32>
    %56 = vector.broadcast %55 : vector<8x1xf32> to vector<8x8xf32>
    %57 = arith.mulf %52, %56 : vector<8x8xf32>
    %cst_19 = arith.constant dense<0.000000e+00> : vector<8x8xf32>
    %58 = tpu.matmul %57, %39, %cst_19 {dimension_numbers = #tpu.dot_dimension_numbers<[1], [0], [0], [1], [0, 0, 1, 1], [], []>} : vector<8x8xf32>, vector<8x8xf32>, vector<8x8xf32> -> vector<8x8xf32>
    %c0_20 = arith.constant 0 : index
    %c0_21 = arith.constant 0 : index
    %c0_22 = arith.constant 0 : index
    %59 = vector.load %arg4[%c0_20, %c0_21, %c0_22] : memref<1x16x32xf32, #tpu.memory_space<vmem>>, vector<1x8x32xf32>
    %60 = vector.shape_cast %59 : vector<1x8x32xf32> to vector<8x32xf32>
    %cst_23 = arith.constant dense<0.000000e+00> : vector<8x32xf32>
    %61 = tpu.matmul %34, %60, %cst_23 {dimension_numbers = #tpu.dot_dimension_numbers<[1], [0], [0], [1], [0, 0, 1, 1], [], []>} : vector<8x8xf32>, vector<8x32xf32>, vector<8x32xf32> -> vector<8x32xf32>
    %c0_24 = arith.constant 0 : index
    %c8 = arith.constant 8 : index
    %c0_25 = arith.constant 0 : index
    %62 = vector.load %arg4[%c0_24, %c8, %c0_25] : memref<1x16x32xf32, #tpu.memory_space<vmem>>, vector<1x8x32xf32>
    %63 = vector.shape_cast %62 : vector<1x8x32xf32> to vector<8x32xf32>
    %cst_26 = arith.constant dense<0.000000e+00> : vector<8x32xf32>
    %64 = tpu.matmul %58, %63, %cst_26 {dimension_numbers = #tpu.dot_dimension_numbers<[1], [0], [0], [1], [0, 0, 1, 1], [], []>} : vector<8x8xf32>, vector<8x32xf32>, vector<8x32xf32> -> vector<8x32xf32>
    %65 = arith.addf %61, %64 : vector<8x32xf32>
    %c0_27 = arith.constant 0 : index
    %c0_28 = arith.constant 0 : index
    %c0_29 = arith.constant 0 : index
    %66 = vector.load %arg8[%c0_27, %c0_28, %c0_29] : memref<1x8x32xf32, #tpu.memory_space<vmem>>, vector<1x8x32xf32>
    %67 = vector.shape_cast %66 : vector<1x8x32xf32> to vector<8x32xf32>
    %68 = arith.addf %67, %65 : vector<8x32xf32>
    %c0_30 = arith.constant 0 : index
    %c0_31 = arith.constant 0 : index
    %c0_32 = arith.constant 0 : index
    %69 = vector.load %arg8[%c0_30, %c0_31, %c0_32] : memref<1x8x32xf32, #tpu.memory_space<vmem>>, vector<1x8x32xf32>
    %70 = vector.shape_cast %69 : vector<1x8x32xf32> to vector<8x32xf32>
    %71 = vector.shape_cast %68 : vector<8x32xf32> to vector<1x8x32xf32>
    tpu.vector_store %arg8[%c0_30, %c0_31, %c0_32], %71 {strides = array<i32>} : memref<1x8x32xf32, #tpu.memory_space<vmem>>, vector<1x8x32xf32>,
    return
  }
  func.func @transform_0(%arg0: i32, %arg1: i32) -> (i32, i32, i32) {
    %c0_i32 = arith.constant 0 : i32
    %c0_i32_0 = arith.constant 0 : i32
    %c0_i32_1 = arith.constant 0 : i32
    return %arg0, %c0_i32, %c0_i32_0 : i32, i32, i32
  }
  func.func @transform_1(%arg0: i32, %arg1: i32) -> (i32, i32, i32) {
    %c0_i32 = arith.constant 0 : i32
    %c0_i32_0 = arith.constant 0 : i32
    %c0_i32_1 = arith.constant 0 : i32
    return %arg1, %c0_i32, %c0_i32_0 : i32, i32, i32
  }
  func.func @transform_2(%arg0: i32, %arg1: i32) -> (i32, i32, i32) {
    %c0_i32 = arith.constant 0 : i32
    %c0_i32_0 = arith.constant 0 : i32
    %c0_i32_1 = arith.constant 0 : i32
    return %arg1, %c0_i32, %c0_i32_0 : i32, i32, i32
  }
  func.func @transform_3(%arg0: i32, %arg1: i32) -> (i32, i32) {
    %c0_i32 = arith.constant 0 : i32
    %c0_i32_0 = arith.constant 0 : i32
    %c0_i32_1 = arith.constant 0 : i32
    return %c0_i32, %c0_i32_0 : i32, i32
  }
  func.func @transform_4(%arg0: i32, %arg1: i32) -> (i32, i32) {
    %c0_i32 = arith.constant 0 : i32
    %c0_i32_0 = arith.constant 0 : i32
    %c0_i32_1 = arith.constant 0 : i32
    return %c0_i32, %c0_i32_0 : i32, i32
  }
  func.func @transform_5(%arg0: i32, %arg1: i32) -> (i32, i32) {
    %c0_i32 = arith.constant 0 : i32
    %c0_i32_0 = arith.constant 0 : i32
    %c0_i32_1 = arith.constant 0 : i32
    return %c0_i32, %c0_i32_0 : i32, i32
  }
  func.func @transform_6(%arg0: i32, %arg1: i32) -> (i32, i32, i32) {
    %c0_i32 = arith.constant 0 : i32
    %c0_i32_0 = arith.constant 0 : i32
    %c0_i32_1 = arith.constant 0 : i32
    return %arg0, %c0_i32, %c0_i32_0 : i32, i32, i32
  }
}

</mosaic_0001>

<bundles_post_ra>
// kernel: tpu_custom_call.1
= control target key start
LH: loop header
LB: loop body
LE: loop exit
PB: predicated region body
PF: predicated region fallthrough
CT: control target
= control target key end

     0   :  { %s2153_s0 = inlined_call_operand.hbm [shape: f32[2,8,32], index: 0, kind: input, shape index: {}]   ;;  %s2154_s1 = inlined_call_operand.hbm [shape: f32[2,32,80], index: 1, kind: input, shape index: {}]   ;;  %s2155_s2 = inlined_call_operand.hbm [shape: f32[2,16,32], index: 2, kind: input, shape index: {}]   ;;  %s2156_s3 = inlined_call_operand.vmem [shape: f32[8,8], index: 3, kind: input, shape index: {}]   ;;  %s2157_s4 = inlined_call_operand.hbm [shape: f32[8,8], index: 4, kind: input, shape index: {}]   ;;  %s2158_s5 = inlined_call_operand.vmem [shape: f32[8,8], index: 5, kind: input, shape index: {}]   ;;  %s2159_s6 = inlined_call_operand.hbm [shape: f32[2,8,32], index: 6, kind: output, shape index: {}]  }
   0x1   :  { %2179 = sst [smem:[#allocation24_spill]] %s2154_s1 }
   0x2   :  { %2180 = sst [smem:[#allocation25_spill]] %s2156_s3 }
   0x3   :  { %2181 = sst [smem:[#allocation26_spill]] %s2157_s4 }
   0x4   :  { %2182 = sst [smem:[#allocation27_spill]] %s2158_s5 }
   0x5   :  { %2183 = sst [smem:[#allocation28_spill]] %s2159_s6 }
   0x6   :  { %11 = vsyncpa [#allocation3], 0 }
   0x7   :  { %13 = vsyncpa [#allocation3 + $0x1], 0 }
   0x8   :  { %14 = vsyncpa [#allocation6], 0 }
   0x9   :  { %16 = vsyncpa [#allocation6 + $0x1], 0 }
   0xa   :  { %17 = vsyncpa [#allocation9], 0 }
   0xb   :  { %18 = vsyncpa [#allocation4], 0 }
   0xc   :  { %20 = vsyncpa [#allocation4 + $0x1], 0  ;;  %s1697_s21 = smov 0   ;;  %s1699_s22 = smov 0  }
   0xd   :  { %s1701_s23 = smov 0   ;;  %s1703_s24 = smov 0  }
   0xe   :  { %s1705_s25 = smov 0   ;;  %s1707_s26 = smov 0  }
   0xf   :  { %s1709_s27 = smov 0   ;;  %s1711_s28 = smov 0  }
  0x10   :  { %s1713_s29 = smov 0   ;;  %s1715_s30 = smov 0  }
  0x11   :  { %s1717_s7 = smov 0  }
  0x12 LB: > { %2184 = sst [smem:[#allocation15_spill]] %s1609_s24  ;;  %s35_s8 = sadd.s32 1, %s1629_s29  ;;  %s1637_s7 = sphi %s1717_s7, %s26_s7   ;;  %s1633_s30 = sphi %s1715_s30, %s2232_s30   ;;  %s1629_s29 = sphi %s1713_s29, %s2231_s29   ;;  %s1625_s28 = sphi %s1711_s28, %s2239_s28   ;;  %s1621_s27 = sphi %s1709_s27, %s2229_s27   ;;  %s1617_s26 = sphi %s1707_s26, %s2238_s26   ;;  %s1613_s25 = sphi %s1705_s25, %s2237_s25   ;;  %s1609_s24 = sphi %s1703_s24, %s2236_s24   ;;  %s1605_s23 = sphi %s1701_s23, %s2235_s23   ;;  %s1601_s22 = sphi %s1699_s22, %s2234_s22   ;;  %s1597_s21 = sphi %s1697_s21, %s2233_s21  }
  0x13   : > { %2185 = sst [smem:[#allocation16_spill]] %s1621_s27  ;;  %p2168_p0 = scmp.eq.s32.totalorder %s1637_s7, 0 }
  0x14   : > { %2186 = sst [smem:[#allocation17_spill]] %s1625_s28  ;;  %p78_p1 = scmp.ne.s32.totalorder %s1605_s23, %s1601_s22 }
  0x15   : > { %2187 = sst [smem:[#allocation18_spill]] %s1629_s29  ;;  %p2160_p2 = scmp.lt.s32.totalorder %s1637_s7, 4 }
  0x16   : > { %2188 = sst [smem:[#allocation19_spill]] %s1633_s30  ;;  %p80_p3 = por %p78_p1, %p2168_p0 }
  0x17   : > { %s258_s10 = sand.u32 1, %s1637_s7   ;;  %s260_s11 = sand.u32 1, %s1605_s23  }
  0x18   : > { %s1148_s12 = sshll.u32 %s260_s11, 5  ;;  %s1174_s13 = sshll.u32 %s1629_s29, 9 }
  0x19   : > { %s2189_s1 = sld [smem:[#allocation24_spill]]  ;;  %s262_s17 = scalar_lea.vmem [#allocation5], %s1148_s12 }
  0x1a   : > { %s269_s18 = sshll.u32 %s262_s17, 4  ;;  %p1772_p4 = pnand %p2160_p2, %p80_p3  ;;  %s1776_s18 = int_to_ptr.vmem [resolvable:$true] %s269_s18 }
  0x1b   : > { %s1778_s20 = scalar_lea.sflag [#allocation6], %s258_s10 }
  0x1c   : > { %s2190_s19 = scalar_select %p1772_p4, 1, 0 }
  0x1d   : > { %p2161_p6 = pneg %p1772_p4 }
  0x1f   : > { %s1768_s16 = scalar_lea.hbm %s2189_s1, %s1174_s13  ;;  %s1394_s15 = scalar_lea.hbm %s2189_s1, 1024 }
  0x20   : > { %s1389_s14 = scalar_lea.hbm %s1768_s16, 512  ;;  %p1395_p9 = scmp.lt.u32.totalorder %s1768_s16, %s2189_s1 }
  0x21   : > { %p1390_p5 = scmp.ne.s32.totalorder %s1768_s16, %s1389_s14  ;;  %p1396_p10 = scmp.lt.u32.totalorder %s1394_s15, %s1389_s14 }
  0x22   : > { %p1398_p12 = scmp.lt.u32.totalorder %s1389_s14, %s1768_s16 }
  0x23   : > { %p1392_p7 = pnand %p2161_p6, %p1390_p5  ;;  %p1397_p11 = por %p1396_p10, %p1395_p9 }
  0x25   : > { %p1393_p8 = pneg %p1392_p7  ;;  %p1399_p13 = por %p1398_p12, %p1397_p11 }
  0x27   : > { %p1400_p1 = pnand %p1399_p13, %p1393_p8 }
  0x29   : > { %1403 = shalt.err (!%p1400_p1)
}
  0x2a   : > { %s1404_s10 = scalar_lea.vmem %s1776_s18, 512  ;;  %s1639_s12 = smov [#allocation5]  }
  0x2b   : > { %p1405_p3 = scmp.ne.s32.totalorder %s1776_s18, %s1404_s10  ;;  %s1409_s13 = sshll.u32 %s1639_s12, 4  ;;  %s1410_s13 = int_to_ptr.vmem [resolvable:$false] %s1409_s13 }
  0x2c   : > { %s1411_s9 = scalar_lea.vmem %s1410_s13, 1024  ;;  %p1412_p2 = scmp.lt.s32.totalorder %s1776_s18, %s1410_s13 }
  0x2d   : > { %p1407_p5 = pnand %p1405_p3, %p2161_p6  ;;  %p1413_p9 = scmp.lt.s32.totalorder %s1411_s9, %s1404_s10 }
  0x2f   : > { %p1408_p7 = pneg %p1407_p5  ;;  %p1414_p10 = por %p1413_p9, %p1412_p2 }
  0x31   : > { %p1415_p11 = pnand %p1414_p10, %p1408_p7 }
  0x33   : > { %1418 = shalt.err (!%p1415_p11)
}
  0x34   : > { %s2162_s14 = smov 128   ;;  %s2163_s15 = smov 8  }
  0x35   : > { %1262 = dma.hbm_to_vmem [thread:$0]  (!%p1772_p4), %s1768_s16, 512, %s1776_s18, %s1778_s20, %s2162_s14, %s2162_s14, %s2163_s15  }
  0x36   : > { %s1151_s17 = sshll.u32 %s260_s11, 4  ;;  %s1814_s13 = sadd.s32 4294967295, %s1637_s7  }
  0x37   : > { %s283_s10 = scalar_lea.vmem [#allocation7], %s1151_s17  ;;  %s1142_s9 = sadd.s32 4294967294, %s1637_s7  }
  0x38   : > { %s1811_s12 = sshll.u32 %s283_s10, 4  ;;  %p58_p2 = scmp.ne.s32.totalorder %s1613_s25, %s1609_s24  ;;  %s1965_s12 = int_to_ptr.vmem [resolvable:$true] %s1811_s12 }
  0x39   : > { %p2167_p8 = scmp.eq.s32.totalorder %s1814_s13, 0  ;;  %p84_p12 = scmp.ne.s32.totalorder %s1601_s22, %s1597_s21 }
  0x3a   : > { %p203_p1 = scmp.eq.s32.totalorder %s1142_s9, 3  ;;  %p1143_p9 = scmp.ge.s32.totalorder %s1637_s7, 1 }
  0x3b   : > { %p1825_p3 = por %p2167_p8, %p58_p2  ;;  %p1831_p5 = por %p84_p12, %p2167_p8 }
  0x3c   : > { %p1835_p7 = por %p203_p1, %p58_p2  ;;  %p210_p10 = scmp.lt.s32.totalorder %s1637_s7, 5 }
  0x3d   : > { %s2191_s11 = scalar_select %p1825_p3, 1, 0 }
  0x3e   : > { %s2192_s16 = scalar_select %p1831_p5, 1, 0 }
  0x3f   : > { %s2193_s18 = scalar_select %p1835_p7, 1, 0 }
  0x40   : > { %p1841_p11 = pnand %p1143_p9, %p210_p10  ;;  %s1642_s17 = smov [#allocation8]  }
  0x41   : > { %2194 = sst [smem:[#allocation20_spill]] %s2193_s18  ;;  %s226_s10 = sshll.u32 %s1642_s17, 4  ;;  %s227_s10 = int_to_ptr.vmem [resolvable:$true] %s226_s10 }
  0x42   : > { %s2195_s21 = scalar_select %p1841_p11, 1, 0 }
  0x43   : > { %p1252_p6 = pneg %p1841_p11  ;;  %p1849_p12 = scmp.ge.s32.totalorder %s35_s8, 2 }
  0x44   : > { %s38_s15 = sadd.s32 1, %s1633_s30  ;;  %s45_s17 = sadd.s32 1, %s1617_s26 }
  0x45   : > { %s2196_s9 = scalar_select %p1849_p12, 1, 0 }
  0x46   : > { %p1855_p2 = pnand %p1252_p6, %p2167_p8  ;;  %s2241_s8 = smov (%p1849_p12, %s35_s8), 0 }
  0x47   : > { %2198 = sst [smem:[#allocation21_spill]] %s2241_s8  ;;  %s2199_s4 = sld [smem:[#allocation26_spill]] }
  0x48   : > { %p1421_p6 = pneg %p1855_p2 }
  0x4d   : > { %s1419_s24 = scalar_lea.hbm %s2199_s4, 128 }
  0x4e   : > { %p1420_p1 = scmp.ne.s32.totalorder %s2199_s4, %s1419_s24  ;;  %p1426_p8 = scmp.lt.u32.totalorder %s1419_s24, %s2199_s4 }
  0x50   : > { %p1422_p9 = pnand %p1421_p6, %p1420_p1 }
  0x52   : > { %p1423_p10 = pneg %p1422_p9 }
  0x54   : > { %p1428_p13 = pnand %p1426_p8, %p1423_p10 }
  0x56   : > { %1431 = shalt.err (!%p1428_p13)
}
  0x57   : > { %s1432_s27 = scalar_lea.vmem %s227_s10, 128  ;;  %p1440_p3 = scmp.lt.s32.totalorder %s227_s10, %s227_s10 }
  0x58   : > { %p1433_p0 = scmp.ne.s32.totalorder %s227_s10, %s1432_s27  ;;  %p1441_p11 = scmp.lt.s32.totalorder %s1432_s27, %s1432_s27 }
  0x5a   : > { %p1435_p7 = pnand %p1433_p0, %p1421_p6  ;;  %p1442_p4 = por %p1441_p11, %p1440_p3 }
  0x5c   : > { %p1436_p5 = pneg %p1435_p7 }
  0x5e   : > { %p1443_p12 = pnand %p1442_p4, %p1436_p5 }
  0x60   : > { %1446 = shalt.err (!%p1443_p12)
}
  0x61   : > { %1255 = dma.hbm_to_vmem [thread:$0]  (!%p1855_p2), %s2199_s4, 128, %s227_s10, [#allocation9]  }
  0x62   : > { %p2200_p0 = scmp.ne.s32.totalorder %s2196_s9, 0  ;;  %p52_p4 = scmp.ne.s32.totalorder %s1617_s26, %s1613_s25 }
  0x63   : > { %s68_s3 = ssub.s32 %s1629_s29, %s2241_s8  ;;  %p2201_p3 = scmp.eq.s32.totalorder %s1637_s7, 0 }
  0x64   : > { %s2243_s15 = smov (!%p2200_p0, %s38_s15), %s1633_s30  ;;  %p69_p13 = scmp.eq.s32.totalorder %s68_s3, 0 }
  0x65   : > { %p40_p8 = scmp.ge.s32.totalorder %s2243_s15, 2  ;;  %p1892_p5 = por %p2201_p3, %p52_p4 }
  0x66   : > { %p2203_p7 = scmp.eq.s32.totalorder %s1814_s13, 3  ;;  %s2206_s27 = sadd.s32 1, %s1605_s23 }
  0x67   : > { %s2245_s15 = smov (%p40_p8, %s2243_s15), 0  ;;  %s240_s18 = sand.u32 1, %s1617_s26  }
  0x68   : > { %p1898_p11 = por %p2203_p7, %p52_p4  ;;  %2205 = sst [smem:[#allocation22_spill]] %s2245_s15 }
  0x69   : > { %s1907_s28 = scalar_select %p69_p13, %s1605_s23, %s2206_s27  }
  0x6a   : > { %s42_s14 = ssub.s32 %s1633_s30, %s2245_s15  ;;  %s1146_s10 = sshll.u32 %s240_s18, 3 }
  0x6b   : > { %p43_p12 = scmp.eq.s32.totalorder %s42_s14, 0  ;;  %s1147_s9 = sshll.u32 %s1633_s30, 7 }
  0x6c   : > { %s1921_s4 = scalar_lea.hbm %s2153_s0, %s1147_s9  ;;  %s244_s8 = scalar_lea.vmem [#allocation2], %s1146_s10 }
  0x6d   : > { %s1916_s1 = scalar_select %p43_p12, %s1617_s26, %s45_s17  }
  0x6e   : > { %s251_s27 = sshll.u32 %s244_s8, 4  ;;  %p2208_p2 = scmp.lt.s32.totalorder %s1637_s7, 4  ;;  %s1931_s27 = int_to_ptr.vmem [resolvable:$true] %s251_s27 }
  0x6f   : > { %2207 = sst [smem:[#allocation23_spill]] %s1916_s1  ;;  %s1175_s17 = sshll.u32 %s1629_s29, 8 }
  0x70   : > { %p1927_p1 = pnand %p2208_p2, %p1892_p5  ;;  %s1937_s3 = scalar_lea.hbm %s2155_s2, %s1175_s17 }
  0x71   : > { %s241_s15 = scalar_lea.sflag [#allocation3], %s240_s18  ;;  %s1447_s10 = scalar_lea.hbm %s1921_s4, 128 }
  0x72   : > { %p1448_p6 = scmp.ne.s32.totalorder %s1921_s4, %s1447_s10  ;;  %p1449_p9 = pneg %p1927_p1 }
  0x73   : > { %s1452_s30 = scalar_lea.hbm %s2153_s0, 256  ;;  %p1453_p4 = scmp.lt.u32.totalorder %s1921_s4, %s2153_s0 }
  0x74   : > { %p1450_p10 = pnand %p1449_p9, %p1448_p6  ;;  %p1454_p8 = scmp.lt.u32.totalorder %s1452_s30, %s1447_s10 }
  0x75   : > { %p1456_p3 = scmp.lt.u32.totalorder %s1447_s10, %s1921_s4 }
  0x76   : > { %p1451_p0 = pneg %p1450_p10  ;;  %p1455_p13 = por %p1454_p8, %p1453_p4 }
  0x78   : > { %p1457_p5 = por %p1456_p3, %p1455_p13 }
  0x7a   : > { %p1458_p7 = pnand %p1457_p5, %p1451_p0 }
  0x7c   : > { %1461 = shalt.err (!%p1458_p7)
}
  0x7d   : > { %s1462_s18 = scalar_lea.vmem %s1931_s27, 128  ;;  %s1643_s17 = smov [#allocation2]  }
  0x7e   : > { %p1463_p12 = scmp.ne.s32.totalorder %s1931_s27, %s1462_s18  ;;  %s1467_s6 = sshll.u32 %s1643_s17, 4  ;;  %s1468_s6 = int_to_ptr.vmem [resolvable:$false] %s1467_s6 }
  0x7f   : > { %s1469_s29 = scalar_lea.vmem %s1468_s6, 256  ;;  %p1470_p10 = scmp.lt.s32.totalorder %s1931_s27, %s1468_s6 }
  0x80   : > { %p1465_p2 = pnand %p1463_p12, %p1449_p9  ;;  %p1471_p4 = scmp.lt.s32.totalorder %s1469_s29, %s1462_s18 }
  0x82   : > { %p1466_p6 = pneg %p1465_p2  ;;  %p1472_p8 = por %p1471_p4, %p1470_p10 }
  0x84   : > { %p1473_p13 = pnand %p1472_p8, %p1466_p6 }
  0x86   : > { %1476 = shalt.err (!%p1473_p13)
}
  0x87   : > { %1259 = dma.hbm_to_vmem [thread:$0]  (!%p1927_p1), %s1921_s4, 128, %s1931_s27, %s241_s15  }
  0x88   : > { %s1477_s30 = scalar_lea.hbm %s1937_s3, 256  ;;  %p2210_p0 = scmp.ne.s32.totalorder %s2190_s19, 0 }
  0x89   : > { %p1478_p9 = scmp.ne.s32.totalorder %s1937_s3, %s1477_s30  ;;  %s1482_s14 = scalar_lea.hbm %s2155_s2, 512 }
  0x8a   : > { %p2211_p3 = pneg %p2210_p0  ;;  %p1483_p12 = scmp.lt.u32.totalorder %s1937_s3, %s2155_s2 }
  0x8b   : > { %p1484_p2 = scmp.lt.u32.totalorder %s1482_s14, %s1477_s30  ;;  %p1486_p10 = scmp.lt.u32.totalorder %s1477_s30, %s1937_s3 }
  0x8c   : > { %p1480_p5 = pnand %p1478_p9, %p2211_p3 }
  0x8d   : > { %p1485_p6 = por %p1484_p2, %p1483_p12 }
  0x8e   : > { %p1481_p7 = pneg %p1480_p5 }
  0x8f   : > { %p1487_p1 = por %p1486_p10, %p1485_p6 }
  0x91   : > { %p1488_p4 = pnand %p1487_p1, %p1481_p7 }
  0x93   : > { %1491 = shalt.err (!%p1488_p4)
}
  0x94   : > { %s1492_s4 = scalar_lea.vmem %s1965_s12, 256  ;;  %p2212_p13 = pmov %p2211_p3 }
  0x95   : > { %p1493_p8 = scmp.ne.s32.totalorder %s1965_s12, %s1492_s4  ;;  %s1644_s15 = smov [#allocation7]  }
  0x96   : > { %s1497_s27 = sshll.u32 %s1644_s15, 4  ;;  %s1498_s27 = int_to_ptr.vmem [resolvable:$false] %s1497_s27 }
  0x97   : > { %p1495_p9 = pnand %p1493_p8, %p2212_p13  ;;  %s1499_s5 = scalar_lea.vmem %s1498_s27, 512 }
  0x98   : > { %p1500_p5 = scmp.lt.s32.totalorder %s1965_s12, %s1498_s27  ;;  %p1501_p12 = scmp.lt.s32.totalorder %s1499_s5, %s1492_s4 }
  0x99   : > { %p1496_p3 = pneg %p1495_p9 }
  0x9a   : > { %p1502_p2 = por %p1501_p12, %p1500_p5 }
  0x9c   : > { %p1503_p6 = pnand %p1502_p2, %p1496_p3 }
  0x9e   : > { %1506 = shalt.err (!%p1503_p6)
}
  0x9f   : > { %s2213_s18 = smov 8   ;;  %s2214_s17 = smov 128  }
  0xa0   : > { %1265 = dma.hbm_to_vmem [thread:$0]  (!%p2210_p0), %s1937_s3, 256, %s1965_s12, %s1778_s20, %s2214_s17, %s2214_s17, %s2213_s18  }
  0xa1   : > { %p2215_p7 = scmp.ne.s32.totalorder %s2195_s21, 0 }
  0xa2   : > { %s1997_s6 = sand.u32 (!%p2215_p7), 1, %s1613_s25   ;;  %p2216_p10 = scmp.ne.s32.totalorder (!%p2215_p7), %s2191_s11, 0 }
  0xa3   : > { %302 = sbr.rel (%p2215_p7) target bundleno = 1630 (0x65e), region = 44  ;;  %s1155_s29 = sshll.u32 (!%p2215_p7), %s1997_s6, 3 }
  0xa4   : > { %s305_s30 = scalar_lea.sflag (!%p2215_p7), [#allocation3], %s1997_s6  ;;  %s2001_s1 = scalar_lea.vmem (!%p2215_p7), [#allocation2], %s1155_s29 }
  0xaa   : > { %1580 = dma.done.wait (%p2216_p10), %s305_s30, 128  }
  0xab   : > { %1582 = vsyncadd (%p2216_p10), %s305_s30, 4294967168  ;;  %s313_s19 = sand.u32 1, %s1814_s13   ;;  %s315_s20 = sand.u32 1, %s1601_s22  }
  0xac   : > { %s1156_s12 = sshll.u32 %s315_s20, 5  ;;  %s314_s21 = scalar_lea.sflag [#allocation6], %s313_s19 }
  0xad   : > { %s317_s3 = scalar_lea.vmem [#allocation5], %s1156_s12  ;;  %p2217_p0 = scmp.ne.s32.totalorder %s2192_s16, 0 }
  0xaf   : > { %1584 = dma.done.wait (%p2217_p0), %s314_s21, 768  }
  0xb0   : > { %1586 = vsyncadd (%p2217_p0), %s314_s21, 4294966528  ;;  %s2013_s9 = sshll.u32 %s315_s20, 4  ;;  %p2218_p1 = scmp.eq.s32.totalorder %s1814_s13, 0 }
  0xb1   : > { %s326_s14 = scalar_lea.vmem [#allocation7], %s2013_s9 }
  0xb2   : > { %1588 = dma.done.wait (%p2218_p1), [#allocation9], 128   ;;  %p2219_p4 = pmov %p2218_p1 }
  0xb3   : > { %s2020_s11 = scalar_lea.vmem [#allocation10], %s1155_s29  ;;  %s2220_s10 = sld [smem:[#allocation16_spill]] }
  0xb4   : > { %1590 = vsyncadd (%p2219_p4), [#allocation9], 4294967168 }
  0xb9   : > { %p1160_p8 = scmp.ne.s32.totalorder %s2220_s10, 0 }
  0xba   : > { %vm373_vm0 = vcmask (!%p1160_p8), 261120   ;;  %v1645_v0 = vmov (!%p1160_p8), 0.0  }
  0xbb   : > { %372 = sbr.rel (%p1160_p8) target bundleno = 194 (0xc2), region = 64  ;;  %374 = vst.msk [vmem:[%s2020_s11] sm:$0xff] (!%p1160_p8), %vm373_vm0, %v1645_v0 }
  0xc2 PF: > { %v379_v1 = vld [vmem:[%s317_s3] sm:$0xff]  ;;  %v380_v2 = vld [vmem:[%s317_s3 + $0x8] sm:$0xff]  ;;  %v381_v3 = vld [vmem:[%s317_s3 + $0x10] sm:$0xff]  ;;  %v1646_v4 = vmov 0.0|0.0   ;;  %vm1647_vm1 = vmmov 0   ;;  %v1648_v7 = vmov 0.0  }
  0xc3   : > { %1234 = vmatprep.subr.bf16.mxu0 %v1646_v4  ;;  %v1235_v5 = vpack.c.bf16 %v380_v2, %v379_v1  ;;  %v382_v6 = vld [vmem:[%s317_s3 + $0x18] sm:$0xff]  ;;  %1201 = vmatprep.mubr.msk.f32.mxu0 %vm1647_vm1, %v1648_v7  ;;  %v377_v8 = vld [vmem:[#allocation8] sm:$0xff]  ;;  %s1649_s13 = smov 24   ;;  %s1650_s16 = smov 48   ;;  %vm383_vm2 = vcmask 261120   ;;  %vm485_vm3 = vcmask 64512  }
  0xc4   : > { %653 = vrot.lane.b32.xlu1 %v377_v8, %s1649_s13  ;;  %473 = vrot.lane.b32.xlu0 %v377_v8, %s1650_s16  ;;  %v1238_v9 = vpack.c.bf16 %v382_v6, %v381_v3  ;;  %s2221_s15 = sld [smem:[#allocation25_spill]]  ;;  %s1651_s27 = smov 32   ;;  %v375_v11 = vld [vmem:[%s2001_s1] sm:$0xff]  ;;  %v842_v3 = vld [vmem:[%s326_s14] sm:$0xff] }
  0xc5   : > { %1236 = vmatpush3.bf16.msra.mxu0 %v1235_v5  ;;  %1204 = vmatprep.subr.mxu1 %v1648_v7  ;;  %s1652_s5 = smov 56   ;;  %s1653_s18 = smov 16  }
  0xc6   : > { %1237 = vmatprep.subr.bf16.mxu0 %v1646_v4  ;;  %1206 = vmatprep.mubr.msk.f32.mxu1 %vm1647_vm1, %v1648_v7  ;;  %s1654_s17 = smov 112   ;;  %s1655_s29 = smov 40   ;;  %v843_v4 = vld [vmem:[%s326_s14 + $0x8] sm:$0xff] }
  0xc7   : > { %s1656_s30 = smov 8   ;;  %s1657_s1 = smov 96  }
  0xc8   : > { %666 = vrot.lane.b32.xlu0 %v377_v8, %s1652_s5  ;;  %s1658_s19 = smov 88   ;;  %s1659_s20 = smov 120  }
  0xc9   : > { %1239 = vmatpush3.bf16.msra.mxu0 %v1238_v9  ;;  %s2222_s3 = sld [smem:[#allocation27_spill]]  ;;  %s1660_s10 = smov 64  }
  0xca   : > { %v376_v10 = vld [vmem:[%s2221_s15] sm:$0xff]  ;;  %1214 = vmatprep.subr.mxu0 %v1648_v7  ;;  %s2223_s13 = sld [smem:[#allocation17_spill]]  ;;  %s1007_s8 = sshll.u32 %s2020_s11, 4  ;;  %s2090_s8 = int_to_ptr.vmem [resolvable:$true] %s1007_s8 }
  0xcb   : > { %469 = vrot.lane.b32.xlu1 %v376_v10, %s1651_s27  ;;  %s2224_s4 = sld [smem:[#allocation28_spill]]  ;;  %s994_s27 = scalar_lea.sflag [#allocation4], %s1997_s6 }
  0xcc   : > { %1202 = vmatmul.mubr.msk.f32.vlgmr.msra.gmra.mrb[0].mxu0 %vm383_vm2, %v375_v11 }
  0xcd   : > { %1216 = vmatprep.mubr.msk.f32.mxu0 %vm1647_vm1, %v1648_v7 }
  0xcf   : > { %459 = vrot.lane.b32.xlu1 %v377_v8, %s1653_s18  ;;  %v378_v40 = vld [vmem:[%s2222_s3] sm:$0xff]  ;;  %s1661_s18 = smov [#allocation10]  }
  0xd0   : > { %s1171_s16 = sshll.u32 %s2223_s13, 7 }
  0xd1   : > { %s2088_s15 = scalar_lea.hbm %s2224_s4, %s1171_s16 }
 0x136   : > { %v474_v12 = vpop.permute.xlu0 %473  ;;  %v654_v13 = vpop.permute.xlu1 %653 }
 0x13a   : > { %v667_v14 = vpop.permute.xlu0 %666 }
 0x13d   : > { %v470_v15 = vpop.permute.xlu1 %469 }
 0x141   : > { %v460_v21 = vpop.permute.xlu1 %459 }
 0x19f   : > { %v2038_v16 = vpop.f32.mrb[0].mxu0 }
 0x1a0   : > { %v1203_v17 = vpop.f32.mrb[1].mxu0  ;;  %v669_v18 = vmul.f32 %v667_v14, %v2038_v16  ;;  %v476_v19 = vmul.f32 %v474_v12, %v2038_v16  ;;  %v656_v20 = vmul.f32 %v654_v13, %v2038_v16  ;;  %v462_v22 = vmul.f32 %v460_v21, %v2038_v16  ;;  %v990_v12 = vld [vmem:[%s2020_s11] sm:$0xff] }
 0x1a1   : > { %v472_v23 = vmul.f32 %v470_v15, %v2038_v16  ;;  %v457_v35 = vmul.f32 %v2038_v16, %v376_v10 }
 0x1a2   : > { %671 = vrot.lane.b32.xlu1 %v669_v18, %s1654_s17  ;;  %478 = vrot.lane.b32.xlu0 %v476_v19, %s1654_s17 }
 0x1a6   : > { %658 = vrot.lane.b32.xlu1 %v656_v20, %s1654_s17  ;;  %662 = vrot.lane.b32.xlu0 %v376_v10, %s1655_s29 }
 0x1aa   : > { %649 = vrot.lane.b32.xlu0 %v376_v10, %s1656_s30  ;;  %464 = vrot.lane.b32.xlu1 %v462_v22, %s1654_s17  ;;  %s1511_s17 = sshll.u32 %s1661_s18, 4  ;;  %s1512_s17 = int_to_ptr.vmem [resolvable:$false] %s1511_s17 }
 0x1ab   : > { %s1513_s29 = scalar_lea.vmem %s1512_s17, 256  ;;  %p1514_p5 = scmp.lt.s32.totalorder %s2090_s8, %s1512_s17 }
 0x214   : > { %v479_v24 = vpop.permute.xlu0 %478  ;;  %v672_v26 = vpop.permute.xlu1 %671 }
 0x215   : > { %v481_v25 = vadd.f32 %v479_v24, %v472_v23 }
 0x217   : > { %483 = vrot.lane.b32.xlu0 %v481_v25, %s1657_s1 }
 0x218   : > { %v663_v27 = vpop.permute.xlu0 %662  ;;  %v659_v32 = vpop.permute.xlu1 %658 }
 0x219   : > { %v665_v28 = vmul.f32 %v663_v27, %v2038_v16 }
 0x21b   : > { %v674_v29 = vadd.f32 %v672_v26, %v665_v28 }
 0x21c   : > { %v650_v30 = vpop.permute.xlu0 %649  ;;  %v465_v34 = vpop.permute.xlu1 %464 }
 0x21d   : > { %v652_v31 = vmul.f32 %v650_v30, %v2038_v16  ;;  %679 = vrot.lane.b32.xlu0 %v674_v29, %s1658_s19  ;;  %v467_v37 = vadd.f32 %v465_v34, %v457_v35 }
 0x21f   : > { %v661_v33 = vadd.f32 %v659_v32, %v652_v31 }
 0x221   : > { %676 = vrot.lane.b32.xlu1 %v661_v33, %s1659_s20 }
 0x289   : > { %v484_v36 = vpop.permute.xlu0 %483 }
 0x28a   : > { %1205 = vmatpush3.xpose.msk.msra.mxu1 %vm485_vm3, %v484_v36 }
 0x28b   : > { %1209 = vmatprep.subr.mxu1 %v1648_v7 }
 0x28d   : > { %1207 = vmatmul.mubr.msk.f32.vlgmr.msra.gmra.mrb[0].mxu1 %vm485_vm3, %v467_v37 }
 0x28e   : > { %1211 = vmatprep.mubr.msk.f32.mxu1 %vm1647_vm1, %v1648_v7 }
 0x28f   : > { %v680_v38 = vpop.permute.xlu0 %679 }
 0x290   : > { %1215 = vmatpush3.xpose.msk.msra.mxu0 %vm485_vm3, %v680_v38 }
 0x291   : > { %1224 = vmatprep.subr.mxu0 %v1648_v7 }
 0x293   : > { %v677_v39 = vpop.permute.xlu1 %676 }
 0x294   : > { %1217 = vmatmul.mubr.msk.f32.vlgmr.msra.gmra.mrb[2].mxu0 %vm485_vm3, %v677_v39 }
 0x295   : > { %1226 = vmatprep.mubr.msk.f32.mxu0 %vm1647_vm1, %v1648_v7  ;;  %1225 = vmatpush3.msra.mxu0 %v843_v4 }
 0x360   : > { %v557_v41 = vpop.f32.mrb[0].mxu1 }
 0x361   : > { %v558_v42 = vadd.f32 %v557_v41, %v378_v40  ;;  %v1208_v43 = vpop.f32.mrb[1].mxu1 }
 0x363   : > { %v561_v44 = vsel %vm485_vm3, %v558_v42, -inf }
 0x364   : > { %562 = vmax.xlane.f32.xlu0 %v561_v44 }
 0x367   : > { %v751_v45 = vpop.f32.mrb[2].mxu0 }
 0x368   : > { %v752_v46 = vadd.f32 %v751_v45, %v378_v40  ;;  %v1218_v47 = vpop.f32.mrb[3].mxu0 }
 0x36a   : > { %v755_v48 = vsel %vm485_vm3, %v752_v46, -inf }
 0x36b   : > { %756 = vmax.xlane.f32.xlu1 %v755_v48 }
 0x37c   : > { %573 = vrot.lane.b32.xlu1 %v2038_v16, %s1660_s10 }
 0x3f1   : > { %v563_v49 = vpop.xlane.xlu0 %562 }
 0x3f2   : > { %v564_v50 = vsub.f32 %v558_v42, %v563_v49 }
 0x3f4   : > { %v565_v51 = vmul.f32 1.442695, %v564_v50 }
 0x3f6   : > { %1381 = vpow2.f32 %v565_v51 }
 0x3f8   : > { %v757_v52 = vpop.xlane.xlu1 %756 }
 0x3f9   : > { %v758_v53 = vsub.f32 %v752_v46, %v757_v52 }
 0x3fb   : > { %v759_v54 = vmul.f32 1.442695, %v758_v53 }
 0x3fc   : > { %v574_v55 = vpop.permute.xlu1 %573 }
 0x3fd   : > { %1383 = vpow2.f32 %v759_v54  ;;  %1210 = vmatpush3.msra.mxu1 %v574_v55 }
 0x3fe   : > { %1219 = vmatprep.subr.mxu1 %v1648_v7 }
 0x400   : > { %v1382_v56 = vpop.eup %1381 }
 0x401   : > { %v567_v57 = vsel %vm485_vm3, %v1382_v56, 0.0 }
 0x402   : > { %568 = vadd.xlane.f32.xlu0 %v567_v57 }
 0x407   : > { %v1384_v58 = vpop.eup %1383 }
 0x408   : > { %v761_v59 = vsel %vm485_vm3, %v1384_v58, 0.0 }
 0x409   : > { %762 = vadd.xlane.f32.xlu0 %v761_v59 }
 0x41f   : > { %766 = vrot.lane.b32.xlu0 %v2038_v16, %s1652_s5  ;;  %s1507_s5 = scalar_lea.vmem %s2090_s8, 128 }
 0x420   : > { %p1508_p13 = scmp.ne.s32.totalorder %s2090_s8, %s1507_s5  ;;  %p1515_p12 = scmp.lt.s32.totalorder %s1513_s29, %s1507_s5 }
 0x422   : > { %p1509_p9 = pnand %p1508_p13, %p1898_p11  ;;  %p1516_p2 = por %p1515_p12, %p1514_p5 }
 0x424   : > { %p1510_p3 = pneg %p1509_p9 }
 0x426   : > { %p1517_p6 = pnand %p1516_p2, %p1510_p3 }
 0x48f   : > { %v569_v60 = vpop.xlane.xlu0 %568 }
 0x490   : > { %1385 = vrcp.f32 %v569_v60 }
 0x496   : > { %v763_v61 = vpop.xlane.xlu0 %762 }
 0x497   : > { %1387 = vrcp.f32 %v763_v61 }
 0x49a   : > { %v1386_v62 = vpop.eup %1385  ;;  %v767_v0 = vpop.permute.xlu0 %766 }
 0x49b   : > { %v571_v63 = vmul.f32 %v1386_v62, %v1382_v56 }
 0x49d   : > { %1212 = vmatmul.mubr.msk.f32.vlgmr.msra.gmra.mrb[2].mxu1 %vm485_vm3, %v571_v63 }
 0x49e   : > { %1220 = vmatpush3.msra.mxu1 %v767_v0  ;;  %1221 = vmatprep.mubr.msk.f32.mxu1 %vm1647_vm1, %v1648_v7 }
 0x49f   : > { %1229 = vmatprep.subr.mxu1 %v1648_v7 }
 0x4a1   : > { %v1388_v1 = vpop.eup %1387 }
 0x4a2   : > { %v765_v2 = vmul.f32 %v1388_v1, %v1384_v58 }
 0x4a4   : > { %1222 = vmatmul.mubr.msk.f32.vlgmr.msra.gmra.mrb[4].mxu1 %vm485_vm3, %v765_v2 }
 0x4a5   : > { %1231 = vmatprep.mubr.msk.f32.mxu1 %vm1647_vm1, %v1648_v7  ;;  %1230 = vmatpush3.msra.mxu1 %v842_v3 }
 0x570   : > { %v645_v5 = vpop.f32.mrb[2].mxu1 }
 0x571   : > { %v1213_v6 = vpop.f32.mrb[3].mxu1  ;;  %1232 = vmatmul.mubr.msk.f32.vlgmr.msra.gmra.mrb[6].mxu1 %vm485_vm3, %v645_v5 }
 0x577   : > { %v838_v8 = vpop.f32.mrb[4].mxu1 }
 0x578   : > { %v1223_v9 = vpop.f32.mrb[5].mxu1  ;;  %1227 = vmatmul.mubr.msk.f32.vlgmr.msra.gmra.mrb[4].mxu0 %vm485_vm3, %v838_v8 }
 0x644   : > { %v986_v10 = vpop.f32.mrb[6].mxu1 }
 0x645   : > { %v1233_v7 = vpop.f32.mrb[7].mxu1 }
 0x64b   : > { %v913_v11 = vpop.f32.mrb[4].mxu0 }
 0x64c   : > { %v987_v13 = vadd.f32 %v986_v10, %v913_v11  ;;  %v1228_v14 = vpop.f32.mrb[5].mxu0 }
 0x64e   : > { %v991_v15 = vadd.f32 %v990_v12, %v987_v13 }
 0x650   : > { %992 = vst.msk [vmem:[%s2020_s11] sm:$0xff] %vm383_vm2, %v991_v15 }
 0x651   : > { %1520 = shalt.err (!%p1517_p6)
}
 0x652   : > { %s1521_s6 = scalar_lea.hbm %s2088_s15, 128  ;;  %s1525_s1 = scalar_lea.hbm %s2224_s4, 256 }
 0x653   : > { %p1522_p7 = scmp.ne.s32.totalorder %s2088_s15, %s1521_s6  ;;  %p1526_p1 = scmp.lt.u32.totalorder %s2088_s15, %s2224_s4 }
 0x654   : > { %p1527_p4 = scmp.lt.u32.totalorder %s1525_s1, %s1521_s6  ;;  %p1529_p13 = scmp.lt.u32.totalorder %s1521_s6, %s2088_s15 }
 0x655   : > { %p1523_p10 = pnand %p1522_p7, %p1898_p11 }
 0x656   : > { %p1528_p8 = por %p1527_p4, %p1526_p1 }
 0x657   : > { %p1524_p0 = pneg %p1523_p10 }
 0x658   : > { %p1530_p9 = por %p1529_p13, %p1528_p8 }
 0x65a   : > { %p1531_p3 = pnand %p1530_p9, %p1524_p0 }
 0x65c   : > { %1534 = shalt.err (!%p1531_p3)
}
 0x65d   : > { %1250 = dma.vmem_to_hbm [thread:$0]  (%p1898_p11), %s2090_s8, 128, %s2088_s15, %s994_s27  }
 0x65e PF: > { %s2225_s12 = sld [smem:[#allocation15_spill]]  ;;  %s2226_s21 = sld [smem:[#allocation20_spill]] }
 0x65f   : > { %p1273_p5 = scmp.ge.s32.totalorder %s1637_s7, 2 }
 0x664   : > { %s1019_s3 = sand.u32 1, %s2225_s12   ;;  %p2227_p12 = scmp.ne.s32.totalorder %s2226_s21, 0 }
 0x665   : > { %s1020_s10 = scalar_lea.sflag [#allocation4], %s1019_s3 }
 0x666   : > { %p1267_p2 = pnand %p1273_p5, %p2227_p12 }
 0x668   : > { %1592 = dma.done.wait (!%p1267_p2), %s1020_s10, 128  }
 0x669   : > { %1594 = vsyncadd (!%p1267_p2), %s1020_s10, 4294967168  ;;  %s26_s7 = sadd.s32 1, %s1637_s7   ;;  %s2228_s13 = sld [smem:[#allocation23_spill]] }
 0x66a   : > { %p23_p6 = scmp.ge.s32.totalorder %s26_s7, 6   ;;  %s2229_s27 = sld [smem:[#allocation18_spill]] }
 0x66b   : > { %s2230_s16 = sld [smem:[#allocation19_spill]]  ;;  %s2231_s29 = sld [smem:[#allocation21_spill]] }
 0x66c   : > { %s2232_s30 = sld [smem:[#allocation22_spill]]  ;;  %s2233_s21 = smov %s1601_s22 }
 0x66d   : > { %s2234_s22 = smov %s1605_s23  ;;  %s2235_s23 = smov %s1907_s28 }
 0x66e   : > { %s2236_s24 = smov %s1613_s25  ;;  %s2237_s25 = smov %s1617_s26 }
 0x66f   : > { %s2238_s26 = smov %s2228_s13  ;;  %25 = sbr.rel (!%p23_p6) target bundleno = 18 (0x12), region = 121 }
 0x671   : > { %s2239_s28 = smov %s2230_s16 }
 0x676   :  { %1025 = vsyncpa [#allocation3], 1 }
 0x677   :  { %1027 = vsyncpa [#allocation3 + $0x1], 1 }
 0x678   :  { %1028 = vsyncpa [#allocation6], 1 }
 0x679   :  { %1030 = vsyncpa [#allocation6 + $0x1], 1 }
 0x67a   :  { %1031 = vsyncpa [#allocation9], 1 }
 0x67b   :  { %1032 = vsyncpa [#allocation4], 1 }
 0x67c   :  { %1034 = vsyncpa [#allocation4 + $0x1], 1 }

</bundles_post_ra>
